<compile_context>
chip_gen: v7x
topology: tpu7x:2x2x1
jax: 0.10.0
libtpu: 0.0.40
codegen_flags: <defaults>
</compile_context>

<pallas_src>
import jax
import jax.numpy as jnp
import numpy as np
from jax import lax
from jax.experimental import pallas as pl
from jax.experimental.pallas import tpu as pltpu


def fusion_kernel(x1_ref, x2_ref, wh_ref, sp_ref, out_ref):
    """One batch tile.

    x1_ref, x2_ref : (TB, D) f32   streaming activation tiles
    wh_ref         : (8, D)  f32   row 0 = wA, row 1 = wB, rows 2..7 zero pad
    sp_ref         : SMEM (44,) f32 flat small params:
                       [0]=bA [1]=bB
                       [2+k]  = W1[0,k]  (k=0..7)  Linear(2,8) weight^T
                       [10+k] = W1[1,k]
                       [18+k] = b1[k]
                       [26+k] = W2[0,k]            Linear(8,2) weight (out,in)
                       [34+k] = W2[1,k]
                       [42]=b2[0] [43]=b2[1]
    out_ref        : (1, TB) f32   lane-dense fused probabilities
    """
    x1 = x1_ref[...]
    x2 = x2_ref[...]
    wh = wh_ref[...]

    # Lane-major logits straight off the MXU: (8, D) . (TB, D)^T -> (8, TB).
    # Batch lands on lanes, so the whole epilogue and the final store are
    # lane-dense (no (TB, 1) single-lane intermediates, no masked vst.msk).
    dnums = (((1,), (1,)), ((), ()))
    la = lax.dot_general(wh, x1, dnums,
                         preferred_element_type=jnp.float32)[0:1, :] + sp_ref[0]
    lb = lax.dot_general(wh, x2, dnums,
                         preferred_element_type=jnp.float32)[1:2, :] + sp_ref[1]

    # Attention MLP: Linear(2,8) -> tanh -> Linear(8,2), fully unrolled with
    # SMEM scalar weights; every intermediate is a (1, TB) lane-major slab.
    s0 = jnp.full_like(la, sp_ref[42])
    s1 = jnp.full_like(la, sp_ref[43])
    for k in range(8):
        h_k = jnp.tanh(la * sp_ref[2 + k] + lb * sp_ref[10 + k] + sp_ref[18 + k])
        s0 = s0 + h_k * sp_ref[26 + k]
        s1 = s1 + h_k * sp_ref[34 + k]

    # 2-way softmax == sigmoid of the score difference (drops one exp + max);
    # reciprocals go to the EUP via the approximate path.
    w0 = pl.reciprocal(1.0 + jnp.exp(s1 - s0), approx=True)
    w1 = 1.0 - w0
    probA = pl.reciprocal(1.0 + jnp.exp(-la), approx=True)
    probB = pl.reciprocal(1.0 + jnp.exp(-lb), approx=True)

    out_ref[...] = w0 * probA + w1 * probB


def _round_up(x, m):
    return ((x + m - 1) // m) * m


def _pick_tile_b(D):
    # Two streaming f32 inputs, double-buffered: 2 * 2 * tile_b * D * 4 bytes.
    # Budget ~24 MiB so we sit comfortably under a 32 MiB scoped-VMEM limit on
    # every generation (v7x has only 64 MiB physical VMEM).
    budget = 24 * 1024 * 1024
    per_row = 2 * 2 * D * 4
    t = budget // per_row
    return int(max(128, min(2048, (t // 128) * 128)))


def attention_fusion(x1, x2, wA, wB, bA, bB, W1, b1, W2, b2, *, tile_b=None):
    """Fused AttentionFusion forward. Returns shape (B,) float32."""
    B, D = x1.shape
    if tile_b is None:
        tile_b = _pick_tile_b(D)
    tb = min(tile_b, _round_up(B, 128))
    assert tb % 128 == 0, "tile_b must be a multiple of 128 (lane-dense output)"
    Bp = _round_up(B, tb)
    if Bp != B:
        x1 = jnp.pad(x1, ((0, Bp - B), (0, 0)))
        x2 = jnp.pad(x2, ((0, Bp - B), (0, 0)))

    # Head weights as one sublane-tile-aligned (8, D) slab (rows 2..7 zero).
    wh = jnp.zeros((8, D), jnp.float32)
    wh = wh.at[0].set(wA.reshape(D).astype(jnp.float32))
    wh = wh.at[1].set(wB.reshape(D).astype(jnp.float32))

    # All tiny attention params flattened into one SMEM vector.
    sp = jnp.concatenate([
        jnp.stack([bA, bB]).astype(jnp.float32).reshape(2),
        W1.astype(jnp.float32).reshape(16),
        b1.astype(jnp.float32).reshape(8),
        W2.astype(jnp.float32).reshape(16),
        b2.astype(jnp.float32).reshape(2),
    ])

    grid = (Bp // tb,)
    out = pl.pallas_call(
        fusion_kernel,
        out_shape=jax.ShapeDtypeStruct((1, Bp), jnp.float32),
        grid=grid,
        in_specs=[
            pl.BlockSpec((tb, D), lambda i: (i, 0)),             # x1 tile
            pl.BlockSpec((tb, D), lambda i: (i, 0)),             # x2 tile
            pl.BlockSpec((8, D), lambda i: (0, 0)),              # head weights (resident)
            pl.BlockSpec(memory_space=pltpu.MemorySpace.SMEM),   # small params
        ],
        out_specs=pl.BlockSpec((1, tb), lambda i: (0, i)),       # lane-dense output slab
        compiler_params=pltpu.CompilerParams(
            dimension_semantics=("parallel",),
            vmem_limit_bytes=32 * 1024 * 1024,
        ),
    )(x1, x2, wh, sp)
    # TODO(synk): optional further win per review — accept bf16 x1/x2 (halves
    # HBM traffic); kept f32 to preserve exact v5e-friendly semantics.
    return out.reshape(Bp)[:B]


def reference(x1, x2, wA, wB, bA, bB, W1, b1, W2, b2):
    logitA = x1 @ wA + bA
    logitB = x2 @ wB + bB
    concat = jnp.stack([logitA, logitB], axis=1)          # (B, 2)
    h = jnp.tanh(concat @ W1 + b1)                        # (B, 8)
    s = h @ W2.T + b2                                     # (B, 2)
    w = jax.nn.softmax(s, axis=1)
    return w[:, 0] * jax.nn.sigmoid(logitA) + w[:, 1] * jax.nn.sigmoid(logitB)


if __name__ == "__main__":
    # Small but representative shapes; B is deliberately not a multiple of the
    # tile so the padding path is exercised, and tile_b=128 gives a 4-step grid.
    B, D = 500, 256
    key = jax.random.PRNGKey(0)
    ks = jax.random.split(key, 10)

    x1 = jax.random.normal(ks[0], (B, D), jnp.float32)
    x2 = jax.random.normal(ks[1], (B, D), jnp.float32)

    wA = jax.random.normal(ks[2], (D,), jnp.float32) * 0.2
    wB = jax.random.normal(ks[3], (D,), jnp.float32) * 0.2
    bab = jax.random.normal(ks[4], (2,), jnp.float32) * 0.1
    bA, bB = bab[0], bab[1]
    W1 = jax.random.normal(ks[5], (2, 8), jnp.float32) * 0.5   # Linear(2,8) weight^T
    b1 = jax.random.normal(ks[6], (8,), jnp.float32) * 0.1
    W2 = jax.random.normal(ks[7], (2, 8), jnp.float32) * 0.5   # Linear(8,2) weight (out,in)
    b2 = jax.random.normal(ks[8], (2,), jnp.float32) * 0.1

    out = attention_fusion(x1, x2, wA, wB, bA, bB, W1, b1, W2, b2, tile_b=128)
    out = jax.block_until_ready(out)

    ref = reference(x1, x2, wA, wB, bA, bB, W1, b1, W2, b2)
    # Tolerance covers the EUP approximate-reciprocal path used for the
    # sigmoids / 2-way softmax (outputs are probabilities in [0, 1]).
    np.testing.assert_allclose(np.asarray(out), np.asarray(ref), rtol=5e-3, atol=5e-3)
    print("KERNEL_OK")
</pallas_src>

<mosaic_0001>
module attributes {stable_mosaic.version = 11 : i64} {
  func.func @fusion_kernel(%arg0: i32, %arg1: memref<128x256xf32, #tpu.memory_space<vmem>>, %arg2: memref<128x256xf32, #tpu.memory_space<vmem>>, %arg3: memref<8x256xf32, #tpu.memory_space<vmem>>, %arg4: memref<44xf32, #tpu.memory_space<smem>>, %arg5: memref<1x128xf32, #tpu.memory_space<vmem>>) attributes {dimension_semantics = [#tpu.dimension_semantics<parallel>], iteration_bounds = array<i64: 4>, scalar_prefetch = 0 : i64, scratch_operands = 0 : i64, tpu.core_type = #tpu.core_type<tc>, window_params = [{transform_indices = @transform_0, window_bounds = array<i64: 128, 256>}, {transform_indices = @transform_1, window_bounds = array<i64: 128, 256>}, {pipeline_mode = #tpu.pipeline_mode<synchronous>, transform_indices = @transform_2, window_bounds = array<i64: 8, 256>}, {transform_indices = @transform_3, window_bounds = array<i64: 44>}, {transform_indices = @transform_4, window_bounds = array<i64: 1, 128>}]} {
    %c0 = arith.constant 0 : index
    %c0_0 = arith.constant 0 : index
    %0 = vector.load %arg1[%c0, %c0_0] : memref<128x256xf32, #tpu.memory_space<vmem>>, vector<128x256xf32>
    %c0_1 = arith.constant 0 : index
    %c0_2 = arith.constant 0 : index
    %1 = vector.load %arg2[%c0_1, %c0_2] : memref<128x256xf32, #tpu.memory_space<vmem>>, vector<128x256xf32>
    %c0_3 = arith.constant 0 : index
    %c0_4 = arith.constant 0 : index
    %2 = vector.load %arg3[%c0_3, %c0_4] : memref<8x256xf32, #tpu.memory_space<vmem>>, vector<8x256xf32>
    %cst = arith.constant dense<0.000000e+00> : vector<8x128xf32>
    %3 = tpu.matmul %2, %0, %cst {dimension_numbers = #tpu.dot_dimension_numbers<[1], [1], [0], [0], [0, 0, 1, 0], [], []>} : vector<8x256xf32>, vector<128x256xf32>, vector<8x128xf32> -> vector<8x128xf32>
    %4 = vector.extract_strided_slice %3 {offsets = [0, 0], sizes = [1, 128], strides = [1, 1]} : vector<8x128xf32> to vector<1x128xf32>
    %c0_5 = arith.constant 0 : index
    %5 = memref.load %arg4[%c0_5] : memref<44xf32, #tpu.memory_space<smem>>
    %6 = vector.broadcast %5 : f32 to vector<1x128xf32>
    %7 = arith.addf %4, %6 : vector<1x128xf32>
    %cst_6 = arith.constant dense<0.000000e+00> : vector<8x128xf32>
    %8 = tpu.matmul %2, %1, %cst_6 {dimension_numbers = #tpu.dot_dimension_numbers<[1], [1], [0], [0], [0, 0, 1, 0], [], []>} : vector<8x256xf32>, vector<128x256xf32>, vector<8x128xf32> -> vector<8x128xf32>
    %9 = vector.extract_strided_slice %8 {offsets = [1, 0], sizes = [1, 128], strides = [1, 1]} : vector<8x128xf32> to vector<1x128xf32>
    %c1 = arith.constant 1 : index
    %10 = memref.load %arg4[%c1] : memref<44xf32, #tpu.memory_space<smem>>
    %11 = vector.broadcast %10 : f32 to vector<1x128xf32>
    %12 = arith.addf %9, %11 : vector<1x128xf32>
    %c42 = arith.constant 42 : index
    %13 = memref.load %arg4[%c42] : memref<44xf32, #tpu.memory_space<smem>>
    %14 = vector.broadcast %13 : f32 to vector<1x128xf32>
    %c43 = arith.constant 43 : index
    %15 = memref.load %arg4[%c43] : memref<44xf32, #tpu.memory_space<smem>>
    %16 = vector.broadcast %15 : f32 to vector<1x128xf32>
    %c2 = arith.constant 2 : index
    %17 = memref.load %arg4[%c2] : memref<44xf32, #tpu.memory_space<smem>>
    %18 = vector.broadcast %17 : f32 to vector<1x128xf32>
    %19 = arith.mulf %7, %18 : vector<1x128xf32>
    %c10 = arith.constant 10 : index
    %20 = memref.load %arg4[%c10] : memref<44xf32, #tpu.memory_space<smem>>
    %21 = vector.broadcast %20 : f32 to vector<1x128xf32>
    %22 = arith.mulf %12, %21 : vector<1x128xf32>
    %23 = arith.addf %19, %22 : vector<1x128xf32>
    %c18 = arith.constant 18 : index
    %24 = memref.load %arg4[%c18] : memref<44xf32, #tpu.memory_space<smem>>
    %25 = vector.broadcast %24 : f32 to vector<1x128xf32>
    %26 = arith.addf %23, %25 : vector<1x128xf32>
    %27 = math.tanh %26 : vector<1x128xf32>
    %c26 = arith.constant 26 : index
    %28 = memref.load %arg4[%c26] : memref<44xf32, #tpu.memory_space<smem>>
    %29 = vector.broadcast %28 : f32 to vector<1x128xf32>
    %30 = arith.mulf %27, %29 : vector<1x128xf32>
    %31 = arith.addf %14, %30 : vector<1x128xf32>
    %c34 = arith.constant 34 : index
    %32 = memref.load %arg4[%c34] : memref<44xf32, #tpu.memory_space<smem>>
    %33 = vector.broadcast %32 : f32 to vector<1x128xf32>
    %34 = arith.mulf %27, %33 : vector<1x128xf32>
    %35 = arith.addf %16, %34 : vector<1x128xf32>
    %c3 = arith.constant 3 : index
    %36 = memref.load %arg4[%c3] : memref<44xf32, #tpu.memory_space<smem>>
    %37 = vector.broadcast %36 : f32 to vector<1x128xf32>
    %38 = arith.mulf %7, %37 : vector<1x128xf32>
    %c11 = arith.constant 11 : index
    %39 = memref.load %arg4[%c11] : memref<44xf32, #tpu.memory_space<smem>>
    %40 = vector.broadcast %39 : f32 to vector<1x128xf32>
    %41 = arith.mulf %12, %40 : vector<1x128xf32>
    %42 = arith.addf %38, %41 : vector<1x128xf32>
    %c19 = arith.constant 19 : index
    %43 = memref.load %arg4[%c19] : memref<44xf32, #tpu.memory_space<smem>>
    %44 = vector.broadcast %43 : f32 to vector<1x128xf32>
    %45 = arith.addf %42, %44 : vector<1x128xf32>
    %46 = math.tanh %45 : vector<1x128xf32>
    %c27 = arith.constant 27 : index
    %47 = memref.load %arg4[%c27] : memref<44xf32, #tpu.memory_space<smem>>
    %48 = vector.broadcast %47 : f32 to vector<1x128xf32>
    %49 = arith.mulf %46, %48 : vector<1x128xf32>
    %50 = arith.addf %31, %49 : vector<1x128xf32>
    %c35 = arith.constant 35 : index
    %51 = memref.load %arg4[%c35] : memref<44xf32, #tpu.memory_space<smem>>
    %52 = vector.broadcast %51 : f32 to vector<1x128xf32>
    %53 = arith.mulf %46, %52 : vector<1x128xf32>
    %54 = arith.addf %35, %53 : vector<1x128xf32>
    %c4 = arith.constant 4 : index
    %55 = memref.load %arg4[%c4] : memref<44xf32, #tpu.memory_space<smem>>
    %56 = vector.broadcast %55 : f32 to vector<1x128xf32>
    %57 = arith.mulf %7, %56 : vector<1x128xf32>
    %c12 = arith.constant 12 : index
    %58 = memref.load %arg4[%c12] : memref<44xf32, #tpu.memory_space<smem>>
    %59 = vector.broadcast %58 : f32 to vector<1x128xf32>
    %60 = arith.mulf %12, %59 : vector<1x128xf32>
    %61 = arith.addf %57, %60 : vector<1x128xf32>
    %c20 = arith.constant 20 : index
    %62 = memref.load %arg4[%c20] : memref<44xf32, #tpu.memory_space<smem>>
    %63 = vector.broadcast %62 : f32 to vector<1x128xf32>
    %64 = arith.addf %61, %63 : vector<1x128xf32>
    %65 = math.tanh %64 : vector<1x128xf32>
    %c28 = arith.constant 28 : index
    %66 = memref.load %arg4[%c28] : memref<44xf32, #tpu.memory_space<smem>>
    %67 = vector.broadcast %66 : f32 to vector<1x128xf32>
    %68 = arith.mulf %65, %67 : vector<1x128xf32>
    %69 = arith.addf %50, %68 : vector<1x128xf32>
    %c36 = arith.constant 36 : index
    %70 = memref.load %arg4[%c36] : memref<44xf32, #tpu.memory_space<smem>>
    %71 = vector.broadcast %70 : f32 to vector<1x128xf32>
    %72 = arith.mulf %65, %71 : vector<1x128xf32>
    %73 = arith.addf %54, %72 : vector<1x128xf32>
    %c5 = arith.constant 5 : index
    %74 = memref.load %arg4[%c5] : memref<44xf32, #tpu.memory_space<smem>>
    %75 = vector.broadcast %74 : f32 to vector<1x128xf32>
    %76 = arith.mulf %7, %75 : vector<1x128xf32>
    %c13 = arith.constant 13 : index
    %77 = memref.load %arg4[%c13] : memref<44xf32, #tpu.memory_space<smem>>
    %78 = vector.broadcast %77 : f32 to vector<1x128xf32>
    %79 = arith.mulf %12, %78 : vector<1x128xf32>
    %80 = arith.addf %76, %79 : vector<1x128xf32>
    %c21 = arith.constant 21 : index
    %81 = memref.load %arg4[%c21] : memref<44xf32, #tpu.memory_space<smem>>
    %82 = vector.broadcast %81 : f32 to vector<1x128xf32>
    %83 = arith.addf %80, %82 : vector<1x128xf32>
    %84 = math.tanh %83 : vector<1x128xf32>
    %c29 = arith.constant 29 : index
    %85 = memref.load %arg4[%c29] : memref<44xf32, #tpu.memory_space<smem>>
    %86 = vector.broadcast %85 : f32 to vector<1x128xf32>
    %87 = arith.mulf %84, %86 : vector<1x128xf32>
    %88 = arith.addf %69, %87 : vector<1x128xf32>
    %c37 = arith.constant 37 : index
    %89 = memref.load %arg4[%c37] : memref<44xf32, #tpu.memory_space<smem>>
    %90 = vector.broadcast %89 : f32 to vector<1x128xf32>
    %91 = arith.mulf %84, %90 : vector<1x128xf32>
    %92 = arith.addf %73, %91 : vector<1x128xf32>
    %c6 = arith.constant 6 : index
    %93 = memref.load %arg4[%c6] : memref<44xf32, #tpu.memory_space<smem>>
    %94 = vector.broadcast %93 : f32 to vector<1x128xf32>
    %95 = arith.mulf %7, %94 : vector<1x128xf32>
    %c14 = arith.constant 14 : index
    %96 = memref.load %arg4[%c14] : memref<44xf32, #tpu.memory_space<smem>>
    %97 = vector.broadcast %96 : f32 to vector<1x128xf32>
    %98 = arith.mulf %12, %97 : vector<1x128xf32>
    %99 = arith.addf %95, %98 : vector<1x128xf32>
    %c22 = arith.constant 22 : index
    %100 = memref.load %arg4[%c22] : memref<44xf32, #tpu.memory_space<smem>>
    %101 = vector.broadcast %100 : f32 to vector<1x128xf32>
    %102 = arith.addf %99, %101 : vector<1x128xf32>
    %103 = math.tanh %102 : vector<1x128xf32>
    %c30 = arith.constant 30 : index
    %104 = memref.load %arg4[%c30] : memref<44xf32, #tpu.memory_space<smem>>
    %105 = vector.broadcast %104 : f32 to vector<1x128xf32>
    %106 = arith.mulf %103, %105 : vector<1x128xf32>
    %107 = arith.addf %88, %106 : vector<1x128xf32>
    %c38 = arith.constant 38 : index
    %108 = memref.load %arg4[%c38] : memref<44xf32, #tpu.memory_space<smem>>
    %109 = vector.broadcast %108 : f32 to vector<1x128xf32>
    %110 = arith.mulf %103, %109 : vector<1x128xf32>
    %111 = arith.addf %92, %110 : vector<1x128xf32>
    %c7 = arith.constant 7 : index
    %112 = memref.load %arg4[%c7] : memref<44xf32, #tpu.memory_space<smem>>
    %113 = vector.broadcast %112 : f32 to vector<1x128xf32>
    %114 = arith.mulf %7, %113 : vector<1x128xf32>
    %c15 = arith.constant 15 : index
    %115 = memref.load %arg4[%c15] : memref<44xf32, #tpu.memory_space<smem>>
    %116 = vector.broadcast %115 : f32 to vector<1x128xf32>
    %117 = arith.mulf %12, %116 : vector<1x128xf32>
    %118 = arith.addf %114, %117 : vector<1x128xf32>
    %c23 = arith.constant 23 : index
    %119 = memref.load %arg4[%c23] : memref<44xf32, #tpu.memory_space<smem>>
    %120 = vector.broadcast %119 : f32 to vector<1x128xf32>
    %121 = arith.addf %118, %120 : vector<1x128xf32>
    %122 = math.tanh %121 : vector<1x128xf32>
    %c31 = arith.constant 31 : index
    %123 = memref.load %arg4[%c31] : memref<44xf32, #tpu.memory_space<smem>>
    %124 = vector.broadcast %123 : f32 to vector<1x128xf32>
    %125 = arith.mulf %122, %124 : vector<1x128xf32>
    %126 = arith.addf %107, %125 : vector<1x128xf32>
    %c39 = arith.constant 39 : index
    %127 = memref.load %arg4[%c39] : memref<44xf32, #tpu.memory_space<smem>>
    %128 = vector.broadcast %127 : f32 to vector<1x128xf32>
    %129 = arith.mulf %122, %128 : vector<1x128xf32>
    %130 = arith.addf %111, %129 : vector<1x128xf32>
    %c8 = arith.constant 8 : index
    %131 = memref.load %arg4[%c8] : memref<44xf32, #tpu.memory_space<smem>>
    %132 = vector.broadcast %131 : f32 to vector<1x128xf32>
    %133 = arith.mulf %7, %132 : vector<1x128xf32>
    %c16 = arith.constant 16 : index
    %134 = memref.load %arg4[%c16] : memref<44xf32, #tpu.memory_space<smem>>
    %135 = vector.broadcast %134 : f32 to vector<1x128xf32>
    %136 = arith.mulf %12, %135 : vector<1x128xf32>
    %137 = arith.addf %133, %136 : vector<1x128xf32>
    %c24 = arith.constant 24 : index
    %138 = memref.load %arg4[%c24] : memref<44xf32, #tpu.memory_space<smem>>
    %139 = vector.broadcast %138 : f32 to vector<1x128xf32>
    %140 = arith.addf %137, %139 : vector<1x128xf32>
    %141 = math.tanh %140 : vector<1x128xf32>
    %c32 = arith.constant 32 : index
    %142 = memref.load %arg4[%c32] : memref<44xf32, #tpu.memory_space<smem>>
    %143 = vector.broadcast %142 : f32 to vector<1x128xf32>
    %144 = arith.mulf %141, %143 : vector<1x128xf32>
    %145 = arith.addf %126, %144 : vector<1x128xf32>
    %c40 = arith.constant 40 : index
    %146 = memref.load %arg4[%c40] : memref<44xf32, #tpu.memory_space<smem>>
    %147 = vector.broadcast %146 : f32 to vector<1x128xf32>
    %148 = arith.mulf %141, %147 : vector<1x128xf32>
    %149 = arith.addf %130, %148 : vector<1x128xf32>
    %c9 = arith.constant 9 : index
    %150 = memref.load %arg4[%c9] : memref<44xf32, #tpu.memory_space<smem>>
    %151 = vector.broadcast %150 : f32 to vector<1x128xf32>
    %152 = arith.mulf %7, %151 : vector<1x128xf32>
    %c17 = arith.constant 17 : index
    %153 = memref.load %arg4[%c17] : memref<44xf32, #tpu.memory_space<smem>>
    %154 = vector.broadcast %153 : f32 to vector<1x128xf32>
    %155 = arith.mulf %12, %154 : vector<1x128xf32>
    %156 = arith.addf %152, %155 : vector<1x128xf32>
    %c25 = arith.constant 25 : index
    %157 = memref.load %arg4[%c25] : memref<44xf32, #tpu.memory_space<smem>>
    %158 = vector.broadcast %157 : f32 to vector<1x128xf32>
    %159 = arith.addf %156, %158 : vector<1x128xf32>
    %160 = math.tanh %159 : vector<1x128xf32>
    %c33 = arith.constant 33 : index
    %161 = memref.load %arg4[%c33] : memref<44xf32, #tpu.memory_space<smem>>
    %162 = vector.broadcast %161 : f32 to vector<1x128xf32>
    %163 = arith.mulf %160, %162 : vector<1x128xf32>
    %164 = arith.addf %145, %163 : vector<1x128xf32>
    %c41 = arith.constant 41 : index
    %165 = memref.load %arg4[%c41] : memref<44xf32, #tpu.memory_space<smem>>
    %166 = vector.broadcast %165 : f32 to vector<1x128xf32>
    %167 = arith.mulf %160, %166 : vector<1x128xf32>
    %168 = arith.addf %149, %167 : vector<1x128xf32>
    %169 = arith.subf %168, %164 : vector<1x128xf32>
    %170 = math.exp %169 : vector<1x128xf32>
    %cst_7 = arith.constant 1.000000e+00 : f32
    %171 = vector.broadcast %cst_7 : f32 to vector<1x128xf32>
    %172 = arith.addf %171, %170 : vector<1x128xf32>
    %173 = tpu.reciprocal %172 {approx = true} : vector<1x128xf32> -> vector<1x128xf32>
    %cst_8 = arith.constant 1.000000e+00 : f32
    %174 = vector.broadcast %cst_8 : f32 to vector<1x128xf32>
    %175 = arith.subf %174, %173 : vector<1x128xf32>
    %cst_9 = arith.constant 0.000000e+00 : f32
    %176 = vector.broadcast %cst_9 : f32 to vector<1x128xf32>
    %177 = arith.subf %176, %7 : vector<1x128xf32>
    %178 = math.exp %177 : vector<1x128xf32>
    %cst_10 = arith.constant 1.000000e+00 : f32
    %179 = vector.broadcast %cst_10 : f32 to vector<1x128xf32>
    %180 = arith.addf %179, %178 : vector<1x128xf32>
    %181 = tpu.reciprocal %180 {approx = true} : vector<1x128xf32> -> vector<1x128xf32>
    %cst_11 = arith.constant 0.000000e+00 : f32
    %182 = vector.broadcast %cst_11 : f32 to vector<1x128xf32>
    %183 = arith.subf %182, %12 : vector<1x128xf32>
    %184 = math.exp %183 : vector<1x128xf32>
    %cst_12 = arith.constant 1.000000e+00 : f32
    %185 = vector.broadcast %cst_12 : f32 to vector<1x128xf32>
    %186 = arith.addf %185, %184 : vector<1x128xf32>
    %187 = tpu.reciprocal %186 {approx = true} : vector<1x128xf32> -> vector<1x128xf32>
    %188 = arith.mulf %173, %181 : vector<1x128xf32>
    %189 = arith.mulf %175, %187 : vector<1x128xf32>
    %190 = arith.addf %188, %189 : vector<1x128xf32>
    %c0_13 = arith.constant 0 : index
    %c0_14 = arith.constant 0 : index
    %191 = vector.load %arg5[%c0_13, %c0_14] : memref<1x128xf32, #tpu.memory_space<vmem>>, vector<1x128xf32>
    tpu.vector_store %arg5[%c0_13, %c0_14], %190 {strides = array<i32>} : memref<1x128xf32, #tpu.memory_space<vmem>>, vector<1x128xf32>,
    return
  }
  func.func @transform_0(%arg0: i32) -> (i32, i32) {
    %c0_i32 = arith.constant 0 : i32
    %c0_i32_0 = arith.constant 0 : i32
    return %arg0, %c0_i32 : i32, i32
  }
  func.func @transform_1(%arg0: i32) -> (i32, i32) {
    %c0_i32 = arith.constant 0 : i32
    %c0_i32_0 = arith.constant 0 : i32
    return %arg0, %c0_i32 : i32, i32
  }
  func.func @transform_2(%arg0: i32) -> (i32, i32) {
    %c0_i32 = arith.constant 0 : i32
    %c0_i32_0 = arith.constant 0 : i32
    %c0_i32_1 = arith.constant 0 : i32
    return %c0_i32, %c0_i32_0 : i32, i32
  }
  func.func @transform_3(%arg0: i32) -> i32 {
    %c0_i32 = arith.constant 0 : i32
    %c0_i32_0 = arith.constant 0 : i32
    return %c0_i32 : i32
  }
  func.func @transform_4(%arg0: i32) -> (i32, i32) {
    %c0_i32 = arith.constant 0 : i32
    %c0_i32_0 = arith.constant 0 : i32
    return %c0_i32, %arg0 : i32, i32
  }
}

</mosaic_0001>

<bundles_post_ra>
// kernel: tpu_custom_call.1
= control target key start
LH: loop header
LB: loop body
LE: loop exit
PB: predicated region body
PF: predicated region fallthrough
CT: control target
= control target key end

     0   :  { %s1767_s0 = inlined_call_operand.hbm [shape: f32[512,256], index: 0, kind: input, shape index: {}]   ;;  %s1768_s1 = inlined_call_operand.hbm [shape: f32[512,256], index: 1, kind: input, shape index: {}]   ;;  %s1769_s2 = inlined_call_operand.hbm [shape: f32[8,256], index: 2, kind: input, shape index: {}]   ;;  %s1770_s3 = inlined_call_operand.vmem [shape: f32[44], index: 3, kind: input, shape index: {}]   ;;  %s1771_s4 = inlined_call_operand.hbm [shape: f32[1,512], index: 4, kind: output, shape index: {}]  }
   0x1   :  { %1778 = sst [smem:[#allocation18_spill]] %s1767_s0 }
   0x2   :  { %1779 = sst [smem:[#allocation19_spill]] %s1768_s1 }
   0x3   :  { %1780 = sst [smem:[#allocation20_spill]] %s1769_s2 }
   0x4   :  { %1781 = sst [smem:[#allocation21_spill]] %s1770_s3 }
   0x5   :  { %9 = vsyncpa [#allocation3], 0 }
   0x6   :  { %11 = vsyncpa [#allocation3 + $0x1], 0 }
   0x7   :  { %12 = vsyncpa [#allocation7], 0 }
   0x8   :  { %14 = vsyncpa [#allocation7 + $0x1], 0 }
   0x9   :  { %15 = vsyncpa [#allocation5], 0 }
   0xa   :  { %16 = vsyncpa [#allocation4], 0 }
   0xb   :  { %18 = vsyncpa [#allocation4 + $0x1], 0  ;;  %s1272_s15 = smov 0   ;;  %s1274_s16 = smov 0  }
   0xc   :  { %s1276_s17 = smov 0   ;;  %s1278_s18 = smov 0  }
   0xd LB: > { %1782 = sst [smem:[#allocation16_spill]] %s1234_s17  ;;  %s1293_s19 = sadd.s32 4294967295, %s1238_s18   ;;  %s1238_s18 = sphi %s1278_s18, %s1808_s18   ;;  %s1234_s17 = sphi %s1276_s17, %s1805_s17   ;;  %s1230_s16 = sphi %s1274_s16, %s1807_s16   ;;  %s1226_s15 = sphi %s1272_s15, %s1806_s15  }
   0xe   : > { %s823_s20 = sadd.s32 4294967294, %s1238_s18   ;;  %s1297_s21 = sadd.s32 1, %s1238_s18  }
   0xf   : > { %s31_s22 = sadd.s32 1, %s1234_s17  ;;  %s28_s23 = ssub.s32 %s1238_s18, %s1297_s21 }
  0x10   : > { %p38_p0 = scmp.ne.s32.totalorder %s1234_s17, %s1230_s16  ;;  %p29_p1 = scmp.eq.s32.totalorder %s28_s23, 0 }
  0x11   : > { %p39_p2 = scmp.eq.s32.totalorder %s1238_s18, 0  ;;  %p44_p3 = scmp.ne.s32.totalorder %s1230_s16, %s1226_s15 }
  0x12   : > { %p1772_p4 = scmp.eq.s32.totalorder %s1293_s19, 0  ;;  %p136_p7 = scmp.eq.s32.totalorder %s1293_s19, 3 }
  0x13   : > { %s1309_s24 = scalar_select %p29_p1, %s1234_s17, %s31_s22  }
  0x14   : > { %p1311_p5 = por %p39_p2, %p38_p0  ;;  %p1317_p6 = por %p1772_p4, %p44_p3 }
  0x15   : > { %1783 = sst [smem:[#allocation17_spill]] %s1309_s24  ;;  %p142_p8 = scmp.eq.s32.totalorder %s823_s20, 3 }
  0x16   : > { %s1785_s26 = scalar_select %p1317_p6, 1, 0 }
  0x17   : > { %p824_p9 = scmp.ge.s32.totalorder %s1238_s18, 1  ;;  %p149_p10 = scmp.lt.s32.totalorder %s1238_s18, 5 }
  0x18   : > { %p1324_p11 = por %p136_p7, %p38_p0  ;;  %p1328_p12 = por %p142_p8, %p44_p3 }
  0x19   : > { %p1332_p13 = pnand %p824_p9, %p149_p10  ;;  %s1240_s30 = smov [#allocation8]  }
  0x1a   : > { %s1786_s27 = scalar_select %p1324_p11, 1, 0 }
  0x1b   : > { %s1787_s28 = scalar_select %p1328_p12, 1, 0 }
  0x1c   : > { %s1788_s29 = scalar_select %p1332_p13, 1, 0 }
  0x1d   : > { %p969_p1 = pneg %p1332_p13  ;;  %s162_s5 = sshll.u32 %s1240_s30, 4  ;;  %s163_s5 = int_to_ptr.vmem [resolvable:$true] %s162_s5 }
  0x1e   : > { %p989_p2 = scmp.lt.s32.totalorder %s1238_s18, 4  ;;  %s1790_s3 = sld [smem:[#allocation21_spill]] }
  0x1f   : > { %p1341_p0 = pnand %p969_p1, %p1772_p4  ;;  %s1792_s2 = sld [smem:[#allocation20_spill]] }
  0x20   : > { %p1350_p3 = pnand %p989_p2, %p1311_p5 }
  0x21   : > { %p1059_p8 = pneg %p1341_p0 }
  0x22   : > { %s1791_s10 = scalar_select %p1350_p3, 1, 0 }
  0x24   : > { %s173_s9 = sshll.u32 %s1790_s3, 4  ;;  %s1354_s9 = int_to_ptr.vmem [resolvable:$true] %s173_s9 }
  0x25   : > { %s1057_s13 = scalar_lea.hbm %s1792_s2, 256 }
  0x26   : > { %p1058_p7 = scmp.ne.s32.totalorder %s1792_s2, %s1057_s13  ;;  %p1064_p5 = scmp.lt.u32.totalorder %s1057_s13, %s1792_s2 }
  0x28   : > { %p1060_p9 = pnand %p1059_p8, %p1058_p7 }
  0x2a   : > { %p1061_p10 = pneg %p1060_p9 }
  0x2c   : > { %p1066_p1 = pnand %p1064_p5, %p1061_p10 }
  0x2e   : > { %1069 = shalt.err (!%p1066_p1)
}
  0x2f   : > { %s1070_s25 = scalar_lea.vmem %s163_s5, 256  ;;  %p1078_p11 = scmp.lt.s32.totalorder %s163_s5, %s163_s5 }
  0x30   : > { %p1071_p2 = scmp.ne.s32.totalorder %s163_s5, %s1070_s25  ;;  %p1079_p6 = scmp.lt.s32.totalorder %s1070_s25, %s1070_s25 }
  0x32   : > { %p1073_p4 = pnand %p1071_p2, %p1059_p8  ;;  %p1080_p13 = por %p1079_p6, %p1078_p11 }
  0x34   : > { %p1074_p12 = pneg %p1073_p4 }
  0x36   : > { %p1081_p3 = pnand %p1080_p13, %p1074_p12 }
  0x38   : > { %1084 = shalt.err (!%p1081_p3)
}
  0x39   : > { %972 = dma.hbm_to_vmem [thread:$0]  (!%p1341_p0), %s1792_s2, 256, %s163_s5, [#allocation7]  }
  0x3a   : > { %s184_s8 = sand.u32 1, %s1234_s17   ;;  %s1085_s11 = scalar_lea.vmem %s1354_s9, 16 }
  0x3b   : > { %p1086_p7 = scmp.ne.s32.totalorder %s1354_s9, %s1085_s11  ;;  %p1093_p11 = scmp.lt.s32.totalorder %s1354_s9, %s1354_s9 }
  0x3c   : > { %p1094_p12 = scmp.lt.s32.totalorder %s1085_s11, %s1085_s11 }
  0x3d   : > { %p1088_p4 = pnand %p1086_p7, %p1059_p8 }
  0x3e   : > { %p1095_p13 = por %p1094_p12, %p1093_p11 }
  0x3f   : > { %p1089_p6 = pneg %p1088_p4 }
  0x41   : > { %p1096_p3 = pnand %p1095_p13, %p1089_p6 }
  0x43   : > { %1099 = shalt.err (!%p1096_p3)
}
  0x44   : > { %s1241_s12 = smov [#allocation9]   ;;  %s1389_s5 = sshll.u32 %s184_s8, 8 }
  0x45   : > { %975 = dma.vmem_to_smem (!%p1341_p0), %s1354_s9, 16, %s1241_s12, [#allocation5]  }
  0x46   : > { %s888_s13 = sshll.u32 %s1238_s18, 12  ;;  %s1793_s0 = sld [smem:[#allocation18_spill]] }
  0x47   : > { %s188_s6 = scalar_lea.vmem [#allocation2], %s1389_s5  ;;  %s1402_s25 = scalar_lea.sflag [#allocation3], %s184_s8 }
  0x48   : > { %s196_s23 = sshll.u32 %s188_s6, 4  ;;  %p1794_p8 = scmp.ne.s32.totalorder %s1791_s10, 0  ;;  %s1400_s23 = int_to_ptr.vmem [resolvable:$true] %s196_s23 }
  0x4a   : > { %p1102_p9 = pneg %p1794_p8 }
  0x4c   : > { %s1397_s22 = scalar_lea.hbm %s1793_s0, %s888_s13  ;;  %s1105_s11 = scalar_lea.hbm %s1793_s0, 16384 }
  0x4d   : > { %s1100_s9 = scalar_lea.hbm %s1397_s22, 4096  ;;  %p1106_p1 = scmp.lt.u32.totalorder %s1397_s22, %s1793_s0 }
  0x4e   : > { %p1101_p0 = scmp.ne.s32.totalorder %s1397_s22, %s1100_s9  ;;  %p1107_p2 = scmp.lt.u32.totalorder %s1105_s11, %s1100_s9 }
  0x4f   : > { %p1109_p4 = scmp.lt.u32.totalorder %s1100_s9, %s1397_s22 }
  0x50   : > { %p1103_p10 = pnand %p1102_p9, %p1101_p0  ;;  %p1108_p7 = por %p1107_p2, %p1106_p1 }
  0x52   : > { %p1104_p5 = pneg %p1103_p10  ;;  %p1110_p6 = por %p1109_p4, %p1108_p7 }
  0x54   : > { %p1111_p11 = pnand %p1110_p6, %p1104_p5 }
  0x56   : > { %1114 = shalt.err (!%p1111_p11)
}
  0x57   : > { %s1115_s8 = scalar_lea.vmem %s1400_s23, 4096  ;;  %s1242_s20 = smov [#allocation2]  }
  0x58   : > { %p1116_p12 = scmp.ne.s32.totalorder %s1400_s23, %s1115_s8  ;;  %s1120_s6 = sshll.u32 %s1242_s20, 4  ;;  %s1121_s6 = int_to_ptr.vmem [resolvable:$false] %s1120_s6 }
  0x59   : > { %s1122_s30 = scalar_lea.vmem %s1121_s6, 8192  ;;  %p1123_p0 = scmp.lt.s32.totalorder %s1400_s23, %s1121_s6 }
  0x5a   : > { %p1118_p13 = pnand %p1116_p12, %p1102_p9  ;;  %p1124_p10 = scmp.lt.s32.totalorder %s1122_s30, %s1115_s8 }
  0x5c   : > { %p1119_p3 = pneg %p1118_p13  ;;  %p1125_p1 = por %p1124_p10, %p1123_p0 }
  0x5e   : > { %p1126_p2 = pnand %p1125_p1, %p1119_p3 }
  0x60   : > { %1129 = shalt.err (!%p1126_p2)
}
  0x61   : > { %s1243_s9 = smov 256   ;;  %s1244_s7 = smov 16  }
  0x62   : > { %979 = dma.hbm_to_vmem [thread:$0]  (!%p1794_p8), %s1397_s22, 4096, %s1400_s23, %s1402_s25, %s1243_s9, %s1243_s9, %s1244_s7  }
  0x63   : > { %s1795_s1 = sld [smem:[#allocation19_spill]]  ;;  %s210_s8 = scalar_lea.vmem [#allocation6], %s1389_s5 }
  0x64   : > { %s218_s20 = sshll.u32 %s210_s8, 4  ;;  %s206_s6 = sand.u32 1, %s1238_s18   ;;  %s1441_s20 = int_to_ptr.vmem [resolvable:$true] %s218_s20 }
  0x65   : > { %s1444_s30 = scalar_lea.sflag [#allocation7], %s206_s6 }
  0x69   : > { %s1438_s14 = scalar_lea.hbm %s1795_s1, %s888_s13  ;;  %s1135_s23 = scalar_lea.hbm %s1795_s1, 16384 }
  0x6a   : > { %s1130_s0 = scalar_lea.hbm %s1438_s14, 4096  ;;  %p1136_p6 = scmp.lt.u32.totalorder %s1438_s14, %s1795_s1 }
  0x6b   : > { %p1131_p5 = scmp.ne.s32.totalorder %s1438_s14, %s1130_s0  ;;  %p1137_p11 = scmp.lt.u32.totalorder %s1135_s23, %s1130_s0 }
  0x6c   : > { %p1139_p13 = scmp.lt.u32.totalorder %s1130_s0, %s1438_s14 }
  0x6d   : > { %p1133_p7 = pnand %p1131_p5, %p1102_p9  ;;  %p1138_p12 = por %p1137_p11, %p1136_p6 }
  0x6f   : > { %p1134_p4 = pneg %p1133_p7  ;;  %p1140_p3 = por %p1139_p13, %p1138_p12 }
  0x71   : > { %p1141_p0 = pnand %p1140_p3, %p1134_p4 }
  0x73   : > { %1144 = shalt.err (!%p1141_p0)
}
  0x74   : > { %s1145_s5 = scalar_lea.vmem %s1441_s20, 4096  ;;  %s1245_s12 = smov [#allocation6]  }
  0x75   : > { %p1146_p10 = scmp.ne.s32.totalorder %s1441_s20, %s1145_s5  ;;  %s1150_s8 = sshll.u32 %s1245_s12, 4  ;;  %s1151_s8 = int_to_ptr.vmem [resolvable:$false] %s1150_s8 }
  0x76   : > { %s1152_s6 = scalar_lea.vmem %s1151_s8, 8192  ;;  %p1153_p5 = scmp.lt.s32.totalorder %s1441_s20, %s1151_s8 }
  0x77   : > { %p1148_p1 = pnand %p1146_p10, %p1102_p9  ;;  %p1154_p7 = scmp.lt.s32.totalorder %s1152_s6, %s1145_s5 }
  0x79   : > { %p1149_p2 = pneg %p1148_p1  ;;  %p1155_p6 = por %p1154_p7, %p1153_p5 }
  0x7b   : > { %p1156_p11 = pnand %p1155_p6, %p1149_p2 }
  0x7d   : > { %1159 = shalt.err (!%p1156_p11)
}
  0x7e   : > { %982 = dma.hbm_to_vmem [thread:$0]  (!%p1794_p8), %s1438_s14, 4096, %s1441_s20, %s1444_s30, %s1243_s9, %s1243_s9, %s1244_s7  }
  0x7f   : > { %p1796_p9 = scmp.ne.s32.totalorder %s1788_s29, 0 }
  0x80   : > { %s1476_s0 = sand.u32 (!%p1796_p9), 1, %s1230_s16   ;;  %p1797_p4 = scmp.ne.s32.totalorder (!%p1796_p9), %s1785_s26, 0 }
  0x81   : > { %230 = sbr.rel (%p1796_p9) target bundleno = 517 (0x205), region = 36  ;;  %s837_s22 = sshll.u32 (!%p1796_p9), %s1476_s0, 8 }
  0x82   : > { %s233_s13 = scalar_lea.sflag (!%p1796_p9), [#allocation3], %s1476_s0  ;;  %s1480_s23 = scalar_lea.vmem (!%p1796_p9), [#allocation2], %s837_s22 }
  0x88   : > { %1205 = dma.done.wait (%p1797_p4), %s233_s13, 4096  }
  0x89   : > { %1207 = vsyncadd (%p1797_p4), %s233_s13, 4294963200  ;;  %s241_s10 = sand.u32 1, %s1293_s19   ;;  %s1487_s9 = scalar_lea.vmem [#allocation6], %s837_s22 }
  0x8a   : > { %s242_s29 = scalar_lea.sflag [#allocation7], %s241_s10 }
  0x8b   : > { %1209 = dma.done.wait (%p1797_p4), %s242_s29, 4096  }
  0x8c   : > { %1211 = vsyncadd (%p1797_p4), %s242_s29, 4294963200  ;;  %p1798_p8 = scmp.eq.s32.totalorder %s1293_s19, 0 }
  0x8e   : > { %1213 = dma.done.wait (%p1798_p8), [#allocation7], 256   ;;  %p1799_p12 = pmov %p1798_p8 }
  0x8f   : > { %p1800_p13 = pmov %p1798_p8 }
  0x90   : > { %1215 = vsyncadd (%p1799_p12), [#allocation7], 4294967040 }
  0x91   : > { %1217 = dma.done.wait (%p1800_p13), [#allocation5], 16   ;;  %p1801_p3 = pmov %p1798_p8 }
  0x93   : > { %1219 = vsyncadd (%p1801_p3), [#allocation5], 4294967280 }
  0x94   : > { %258 = sfence }
  0x95   : > { %v318_v0 = vld [vmem:[%s1487_s9 + $0x8] sm:$0xff]  ;;  %v320_v1 = vld [vmem:[%s1487_s9 + $0x18] sm:$0xff]  ;;  %v317_v5 = vld [vmem:[%s1487_s9] sm:$0xff]  ;;  %s1565_s26 = sld [smem:[#allocation9 + $0x1]]  ;;  %s1567_s7 = sld [smem:[#allocation9 + $0xa]] }
  0x96   : > { %v286_v2 = vld [vmem:[%s1480_s23 + $0x8] sm:$0xff]  ;;  %v923_v3 = vpack.c.bf16 %v320_v1, %v318_v0  ;;  %v288_v4 = vld [vmem:[%s1480_s23 + $0x18] sm:$0xff]  ;;  %v319_v6 = vld [vmem:[%s1487_s9 + $0x10] sm:$0xff]  ;;  %s1569_s14 = sld [smem:[#allocation9 + $0xb]]  ;;  %s1571_s20 = sld [smem:[#allocation9 + $0xc]] }
  0x97   : > { %v891_v7 = vpack.c.bf16 %v288_v4, %v286_v2  ;;  %v925_v8 = vpack.c.bf16 %v319_v6, %v317_v5  ;;  %v285_v9 = vld [vmem:[%s1480_s23] sm:$0xff]  ;;  %v287_v10 = vld [vmem:[%s1480_s23 + $0x10] sm:$0xff]  ;;  %v322_v11 = vld [vmem:[%s1487_s9 + $0x28] sm:$0xff]  ;;  %s1573_s30 = sld [smem:[#allocation9 + $0xd]]  ;;  %s1575_s25 = sld [smem:[#allocation9 + $0xe]] }
  0x98   : > { %924 = vmatprep.subr.bf16.mxu1 %v923_v3  ;;  %v893_v12 = vpack.c.bf16 %v287_v10, %v285_v9  ;;  %v324_v13 = vld [vmem:[%s1487_s9 + $0x38] sm:$0xff]  ;;  %v290_v14 = vld [vmem:[%s1480_s23 + $0x28] sm:$0xff]  ;;  %v321_v18 = vld [vmem:[%s1487_s9 + $0x20] sm:$0xff]  ;;  %s1577_s11 = sld [smem:[#allocation9 + $0xf]]  ;;  %s1579_s5 = sld [smem:[#allocation9 + $0x10]] }
  0x99   : > { %v292_v15 = vld [vmem:[%s1480_s23 + $0x38] sm:$0xff]  ;;  %892 = vmatprep.subr.bf16.mxu0 %v891_v7  ;;  %926 = vmatpush1.bf16.xpose.msra.mxu1 %v925_v8  ;;  %v927_v16 = vpack.c.bf16 %v324_v13, %v322_v11  ;;  %v323_v19 = vld [vmem:[%s1487_s9 + $0x30] sm:$0xff]  ;;  %v289_v20 = vld [vmem:[%s1480_s23 + $0x20] sm:$0xff]  ;;  %s1581_s12 = sld [smem:[#allocation9 + $0x11]]  ;;  %s1583_s8 = sld [smem:[#allocation9]] }
  0x9a   : > { %v895_v17 = vpack.c.bf16 %v292_v15, %v290_v14  ;;  %894 = vmatpush1.bf16.xpose.msra.mxu0 %v893_v12  ;;  %v291_v21 = vld [vmem:[%s1480_s23 + $0x30] sm:$0xff]  ;;  %v326_v22 = vld [vmem:[%s1487_s9 + $0x48] sm:$0xff]  ;;  %v328_v23 = vld [vmem:[%s1487_s9 + $0x58] sm:$0xff]  ;;  %v929_v26 = vpack.c.bf16 %v323_v19, %v321_v18  ;;  %s1585_s6 = sld [smem:[#allocation9 + $0x2]]  ;;  %s1587_s22 = sld [smem:[#allocation9 + $0x3]] }
  0x9b   : > { %928 = vmatprep.subr.bf16.mxu1 %v927_v16  ;;  %v294_v24 = vld [vmem:[%s1480_s23 + $0x48] sm:$0xff]  ;;  %v296_v25 = vld [vmem:[%s1480_s23 + $0x58] sm:$0xff]  ;;  %v897_v27 = vpack.c.bf16 %v291_v21, %v289_v20  ;;  %v931_v28 = vpack.c.bf16 %v328_v23, %v326_v22  ;;  %v325_v30 = vld [vmem:[%s1487_s9 + $0x40] sm:$0xff]  ;;  %s1589_s13 = sld [smem:[#allocation9 + $0x4]]  ;;  %s1593_s10 = sld [smem:[#allocation9 + $0x6]] }
  0x9c   : > { %896 = vmatprep.subr.bf16.mxu0 %v895_v17  ;;  %v899_v29 = vpack.c.bf16 %v296_v25, %v294_v24  ;;  %v327_v31 = vld [vmem:[%s1487_s9 + $0x50] sm:$0xff]  ;;  %v293_v32 = vld [vmem:[%s1480_s23 + $0x40] sm:$0xff]  ;;  %v330_v34 = vld [vmem:[%s1487_s9 + $0x68] sm:$0xff]  ;;  %s1595_s29 = sld [smem:[#allocation9 + $0x7]]  ;;  %s1599_s1 = sld [smem:[#allocation9 + $0x13]] }
  0x9d   : > { %v295_v33 = vld [vmem:[%s1480_s23 + $0x50] sm:$0xff]  ;;  %v332_v35 = vld [vmem:[%s1487_s9 + $0x78] sm:$0xff]  ;;  %v298_v36 = vld [vmem:[%s1480_s23 + $0x68] sm:$0xff]  ;;  %v933_v38 = vpack.c.bf16 %v327_v31, %v325_v30  ;;  %s1601_s2 = sld [smem:[#allocation9 + $0x14]]  ;;  %s1603_s3 = sld [smem:[#allocation9 + $0x8]] }
  0x9e   : > { %v300_v37 = vld [vmem:[%s1480_s23 + $0x78] sm:$0xff]  ;;  %v901_v39 = vpack.c.bf16 %v295_v33, %v293_v32  ;;  %v935_v40 = vpack.c.bf16 %v332_v35, %v330_v34  ;;  %v329_v42 = vld [vmem:[%s1487_s9 + $0x60] sm:$0xff]  ;;  %v331_v43 = vld [vmem:[%s1487_s9 + $0x70] sm:$0xff]  ;;  %s1605_s24 = sld [smem:[#allocation9 + $0x15]]  ;;  %s1607_s17 = sld [smem:[#allocation9 + $0x9]]  ;;  %v495_v34 = vstv %s1565_s26 }
  0x9f   : > { %v903_v41 = vpack.c.bf16 %v300_v37, %v298_v36  ;;  %v297_v44 = vld [vmem:[%s1480_s23 + $0x60] sm:$0xff]  ;;  %v350_v45 = vld [vmem:[#allocation8 + $0x8] sm:$0xff]  ;;  %v299_v46 = vld [vmem:[%s1480_s23 + $0x70] sm:$0xff]  ;;  %v937_v51 = vpack.c.bf16 %v331_v43, %v329_v42  ;;  %v505_v35 = vstv %s1567_s7  ;;  %v527_v36 = vstv %s1569_s14  ;;  %s1662_s26 = sld [smem:[#allocation9 + $0x22]]  ;;  %s1666_s14 = sld [smem:[#allocation9 + $0x2b]] }
  0xa0   : > { %v334_v47 = vld [vmem:[%s1487_s9 + $0x88] sm:$0xff]  ;;  %v336_v48 = vld [vmem:[%s1487_s9 + $0x98] sm:$0xff]  ;;  %488 = vmatprep.mubr.f32.mxu1 %v350_v45  ;;  %415 = vmatprep.mubr.f32.mxu0 %v350_v45  ;;  %v905_v52 = vpack.c.bf16 %v299_v46, %v297_v44  ;;  %v333_v55 = vld [vmem:[%s1487_s9 + $0x80] sm:$0xff]  ;;  %v549_v37 = vstv %s1571_s20  ;;  %s1664_s7 = sld [smem:[#allocation9 + $0x2a]]  ;;  %s1669_s20 = sld [smem:[#allocation9 + $0x1b]] }
  0xa1   : > { %930 = vmatpush1.bf16.xpose.msra.mxu1 %v929_v26  ;;  %v302_v49 = vld [vmem:[%s1480_s23 + $0x88] sm:$0xff]  ;;  %v304_v50 = vld [vmem:[%s1480_s23 + $0x98] sm:$0xff]  ;;  %v939_v53 = vpack.c.bf16 %v336_v48, %v334_v47  ;;  %v335_v56 = vld [vmem:[%s1487_s9 + $0x90] sm:$0xff]  ;;  %v659_v42 = vstv %s1581_s12  ;;  %s1681_s12 = sld [smem:[#allocation9 + $0x25]]  ;;  %p1802_p10 = scmp.ne.s32.totalorder %s1786_s27, 0 }
  0xa2   : > { %898 = vmatpush1.bf16.xpose.msra.mxu0 %v897_v27  ;;  %932 = vmatprep.subr.bf16.mxu1 %v931_v28  ;;  %v907_v54 = vpack.c.bf16 %v304_v50, %v302_v49  ;;  %v301_v57 = vld [vmem:[%s1480_s23 + $0x80] sm:$0xff]  ;;  %v303_v58 = vld [vmem:[%s1480_s23 + $0x90] sm:$0xff]  ;;  %v338_v59 = vld [vmem:[%s1487_s9 + $0xa8] sm:$0xff]  ;;  %v941_v63 = vpack.c.bf16 %v335_v56, %v333_v55  ;;  %v422_v43 = vstv %s1583_s8  ;;  %s1685_s8 = sld [smem:[#allocation9 + $0x1e]] }
  0xa3   : > { %900 = vmatprep.subr.bf16.mxu0 %v899_v29  ;;  %v340_v60 = vld [vmem:[%s1487_s9 + $0xb8] sm:$0xff]  ;;  %v306_v61 = vld [vmem:[%s1480_s23 + $0xa8] sm:$0xff]  ;;  %v909_v0 = vpack.c.bf16 %v303_v58, %v301_v57  ;;  %v337_v3 = vld [vmem:[%s1487_s9 + $0xa0] sm:$0xff]  ;;  %v502_v44 = vstv %s1585_s6  ;;  %s1687_s6 = sld [smem:[#allocation9 + $0x26]] }
  0xa4   : > { %v308_v62 = vld [vmem:[%s1480_s23 + $0xb8] sm:$0xff]  ;;  %v943_v1 = vpack.c.bf16 %v340_v60, %v338_v59  ;;  %v339_v4 = vld [vmem:[%s1487_s9 + $0xb0] sm:$0xff]  ;;  %v305_v5 = vld [vmem:[%s1480_s23 + $0xa0] sm:$0xff]  ;;  %v524_v45 = vstv %s1587_s22  ;;  %s1693_s22 = sld [smem:[#allocation9 + $0x1f]] }
  0xa5   : > { %v911_v2 = vpack.c.bf16 %v308_v62, %v306_v61  ;;  %v307_v6 = vld [vmem:[%s1480_s23 + $0xb0] sm:$0xff]  ;;  %v342_v7 = vld [vmem:[%s1487_s9 + $0xc8] sm:$0xff]  ;;  %v344_v8 = vld [vmem:[%s1487_s9 + $0xd8] sm:$0xff]  ;;  %v945_v11 = vpack.c.bf16 %v339_v4, %v337_v3  ;;  %v546_v47 = vstv %s1589_s13  ;;  %s1695_s13 = sld [smem:[#allocation9 + $0x27]] }
  0xa6   : > { %v310_v9 = vld [vmem:[%s1480_s23 + $0xc8] sm:$0xff]  ;;  %v312_v10 = vld [vmem:[%s1480_s23 + $0xd8] sm:$0xff]  ;;  %v913_v12 = vpack.c.bf16 %v307_v6, %v305_v5  ;;  %v947_v13 = vpack.c.bf16 %v344_v8, %v342_v7  ;;  %v341_v15 = vld [vmem:[%s1487_s9 + $0xc0] sm:$0xff]  ;;  %v590_v49 = vstv %s1593_s10  ;;  %s1701_s10 = sld [smem:[#allocation9 + $0x28]] }
  0xa7   : > { %v915_v14 = vpack.c.bf16 %v312_v10, %v310_v9  ;;  %v343_v16 = vld [vmem:[%s1487_s9 + $0xd0] sm:$0xff]  ;;  %v309_v17 = vld [vmem:[%s1480_s23 + $0xc0] sm:$0xff]  ;;  %v346_v19 = vld [vmem:[%s1487_s9 + $0xe8] sm:$0xff]  ;;  %v612_v50 = vstv %s1595_s29  ;;  %s1705_s29 = sld [smem:[#allocation9 + $0x21]] }
  0xa8   : > { %v311_v18 = vld [vmem:[%s1480_s23 + $0xd0] sm:$0xff]  ;;  %v348_v20 = vld [vmem:[%s1487_s9 + $0xf8] sm:$0xff]  ;;  %v314_v21 = vld [vmem:[%s1480_s23 + $0xe8] sm:$0xff]  ;;  %v949_v23 = vpack.c.bf16 %v343_v16, %v341_v15  ;;  %v556_v55 = vstv %s1601_s2  ;;  %s1645_s2 = sld [smem:[#allocation9 + $0x17]] }
  0xa9   : > { %934 = vmatpush1.bf16.xpose.msra.mxu1 %v933_v38  ;;  %v316_v22 = vld [vmem:[%s1480_s23 + $0xf8] sm:$0xff]  ;;  %v917_v24 = vpack.c.bf16 %v311_v18, %v309_v17  ;;  %v951_v25 = vpack.c.bf16 %v348_v20, %v346_v19  ;;  %v345_v27 = vld [vmem:[%s1487_s9 + $0xe0] sm:$0xff]  ;;  %v347_v28 = vld [vmem:[%s1487_s9 + $0xf0] sm:$0xff]  ;;  %s1597_s9 = sld [smem:[#allocation9 + $0x12]]  ;;  %v571_v38 = vstv %s1573_s30  ;;  %s1671_s30 = sld [smem:[#allocation9 + $0x23]] }
  0xaa   : > { %902 = vmatpush1.bf16.xpose.msra.mxu0 %v901_v39  ;;  %936 = vmatprep.subr.bf16.mxu1 %v935_v40  ;;  %v919_v26 = vpack.c.bf16 %v316_v22, %v314_v21  ;;  %v313_v29 = vld [vmem:[%s1480_s23 + $0xe0] sm:$0xff]  ;;  %v315_v30 = vld [vmem:[%s1480_s23 + $0xf0] sm:$0xff]  ;;  %v953_v31 = vpack.c.bf16 %v347_v28, %v345_v27  ;;  %s1591_s23 = sld [smem:[#allocation9 + $0x5]]  ;;  %v593_v39 = vstv %s1575_s25  ;;  %v615_v40 = vstv %s1577_s11  ;;  %s1674_s25 = sld [smem:[#allocation9 + $0x1c]] }
  0xab   : > { %904 = vmatprep.subr.bf16.mxu0 %v903_v41  ;;  %v921_v32 = vpack.c.bf16 %v315_v30, %v313_v29  ;;  %v349_v33 = vld [vmem:[#allocation8] sm:$0xff]  ;;  %v637_v41 = vstv %s1579_s5  ;;  %v578_v58 = vstv %s1605_s24  ;;  %v634_v59 = vstv %s1603_s3  ;;  %s1655_s3 = sld [smem:[#allocation9 + $0x18]]  ;;  %s1660_s24 = sld [smem:[#allocation9 + $0x1a]] }
  0xac   : > { %v656_v60 = vstv %s1607_s17  ;;  %s1657_s17 = sld [smem:[#allocation9 + $0x19]]  ;;  %s1676_s11 = sld [smem:[#allocation9 + $0x24]] }
  0xad   : > { %s1679_s5 = sld [smem:[#allocation9 + $0x1d]] }
  0xb0   : > { %v568_v48 = vstv %s1591_s23  ;;  %s1699_s23 = sld [smem:[#allocation9 + $0x20]] }
  0xb1   : > { %938 = vmatpush1.bf16.xpose.msra.mxu1 %v937_v51 }
  0xb2   : > { %906 = vmatpush1.bf16.xpose.msra.mxu0 %v905_v52  ;;  %940 = vmatprep.subr.bf16.mxu1 %v939_v53  ;;  %v512_v53 = vstv %s1597_s9  ;;  %s1707_s9 = sld [smem:[#allocation9 + $0x29]] }
  0xb3   : > { %908 = vmatprep.subr.bf16.mxu0 %v907_v54  ;;  %v534_v54 = vstv %s1599_s1  ;;  %s1643_s1 = sld [smem:[#allocation9 + $0x16]] }
  0xb9   : > { %942 = vmatpush1.bf16.xpose.msra.mxu1 %v941_v63 }
  0xba   : > { %910 = vmatpush1.bf16.xpose.msra.mxu0 %v909_v0  ;;  %944 = vmatprep.subr.bf16.mxu1 %v943_v1 }
  0xbb   : > { %912 = vmatprep.subr.bf16.mxu0 %v911_v2 }
  0xc1   : > { %946 = vmatpush1.bf16.xpose.msra.mxu1 %v945_v11 }
  0xc2   : > { %914 = vmatpush1.bf16.xpose.msra.mxu0 %v913_v12  ;;  %948 = vmatprep.subr.bf16.mxu1 %v947_v13 }
  0xc3   : > { %916 = vmatprep.subr.bf16.mxu0 %v915_v14 }
  0xc9   : > { %950 = vmatpush1.bf16.xpose.msra.mxu1 %v949_v23 }
  0xca   : > { %918 = vmatpush1.bf16.xpose.msra.mxu0 %v917_v24  ;;  %952 = vmatprep.subr.bf16.mxu1 %v951_v25 }
  0xcb   : > { %920 = vmatprep.subr.bf16.mxu0 %v919_v26 }
  0xd1   : > { %954 = vmatpush1.bf16.xpose.msra.mxu1 %v953_v31 }
  0xd2   : > { %922 = vmatpush1.bf16.xpose.msra.mxu0 %v921_v32 }
  0xd8   : > { %489 = vmatmul.mubr.f32.vlgmr.msra.gmra.mrb[0].mxu1 %v349_v33 }
  0xd9   : > { %416 = vmatmul.mubr.f32.vlgmr.msra.gmra.mrb[0].mxu0 %v349_v33  ;;  %v600_v33 = vstv %s1643_s1  ;;  %s884_s1 = sshll.u32 %s1293_s19, 4  ;;  %s1246_s19 = smov [#allocation10]  }
 0x1ab   : > { %v490_v46 = vpop.f32.mrb[0].mxu1 }
 0x1ac   : > { %v1625_v51 = vadd.f32 %v495_v34, %v490_v46  ;;  %v417_v52 = vpop.f32.mrb[0].mxu0  ;;  %v492_v56 = vpop.f32.mrb[1].mxu1  ;;  %v500_v46 = vstv %s1666_s14 }
 0x1ad   : > { %v1630_v57 = vadd.f32 %v422_v43, %v417_v52  ;;  %v419_v61 = vpop.f32.mrb[1].mxu0 }
 0x1ae   : > { %v506_v62 = vmul.f32 %v505_v35, %v1625_v51  ;;  %v528_v63 = vmul.f32 %v527_v36, %v1625_v51  ;;  %v550_v0 = vmul.f32 %v549_v37, %v1625_v51  ;;  %v572_v1 = vmul.f32 %v571_v38, %v1625_v51 }
 0x1af   : > { %v594_v2 = vmul.f32 %v593_v39, %v1625_v51  ;;  %v616_v3 = vmul.f32 %v615_v40, %v1625_v51  ;;  %v638_v4 = vmul.f32 %v637_v41, %v1625_v51  ;;  %v660_v5 = vmul.f32 %v659_v42, %v1625_v51 }
 0x1b0   : > { %v508_v6 = vrot.slane %v506_v62, 1  ;;  %v530_v7 = vrot.slane %v528_v63, 1  ;;  %v552_v8 = vrot.slane %v550_v0, 1  ;;  %v574_v9 = vrot.slane %v572_v1, 1 }
 0x1b1   : > { %v596_v10 = vrot.slane %v594_v2, 1  ;;  %v618_v11 = vrot.slane %v616_v3, 1  ;;  %v640_v12 = vrot.slane %v638_v4, 1  ;;  %v662_v13 = vrot.slane %v660_v5, 1 }
 0x1b2   : > { %v503_v14 = vmul.f32 %v502_v44, %v1630_v57  ;;  %v525_v15 = vmul.f32 %v524_v45, %v1630_v57  ;;  %v547_v16 = vmul.f32 %v546_v47, %v1630_v57  ;;  %v569_v17 = vmul.f32 %v568_v48, %v1630_v57 }
 0x1b3   : > { %v591_v18 = vmul.f32 %v590_v49, %v1630_v57  ;;  %v613_v19 = vmul.f32 %v612_v50, %v1630_v57  ;;  %v635_v20 = vmul.f32 %v634_v59, %v1630_v57  ;;  %v657_v21 = vmul.f32 %v656_v60, %v1630_v57 }
 0x1b4   : > { %v510_v22 = vadd.f32 %v508_v6, %v503_v14  ;;  %v532_v23 = vadd.f32 %v530_v7, %v525_v15  ;;  %v554_v24 = vadd.f32 %v552_v8, %v547_v16  ;;  %v576_v25 = vadd.f32 %v574_v9, %v569_v17 }
 0x1b5   : > { %v598_v26 = vadd.f32 %v596_v10, %v591_v18  ;;  %v620_v27 = vadd.f32 %v618_v11, %v613_v19  ;;  %v642_v28 = vadd.f32 %v640_v12, %v635_v20  ;;  %v664_v29 = vadd.f32 %v662_v13, %v657_v21 }
 0x1b6   : > { %v513_v30 = vadd.f32 %v512_v53, %v510_v22  ;;  %v535_v31 = vadd.f32 %v534_v54, %v532_v23  ;;  %v557_v32 = vadd.f32 %v556_v55, %v554_v24  ;;  %v579_v34 = vadd.f32 %v578_v58, %v576_v25 }
 0x1b7   : > { %v622_v35 = vstv %s1645_s2  ;;  %v601_v36 = vadd.f32 %v600_v33, %v598_v26  ;;  %v644_v37 = vstv %s1655_s3  ;;  %v666_v39 = vstv %s1657_s17  ;;  %s282_s2 = scalar_lea.vmem [#allocation10], %s1476_s0 }
 0x1b8   : > { %1029 = vtanh.f32 %v513_v30  ;;  %v623_v38 = vadd.f32 %v622_v35, %v620_v27  ;;  %v645_v40 = vadd.f32 %v644_v37, %v642_v28  ;;  %v516_v41 = vstv %s1660_s24  ;;  %s713_s3 = sshll.u32 %s282_s2, 4  ;;  %s1726_s3 = int_to_ptr.vmem [resolvable:$true] %s713_s3 }
 0x1b9   : > { %1031 = vtanh.f32 %v535_v31  ;;  %v520_v42 = vstv %s1662_s26  ;;  %v667_v43 = vadd.f32 %v666_v39, %v664_v29  ;;  %v498_v44 = vstv %s1664_s7  ;;  %s1724_s26 = scalar_lea.hbm %s1771_s4, %s884_s1  ;;  %s701_s7 = scalar_lea.sflag [#allocation4], %s1476_s0 }
 0x1ba   : > { %1033 = vtanh.f32 %v557_v32  ;;  %v538_v47 = vstv %s1669_s20  ;;  %v542_v48 = vstv %s1671_s30  ;;  %v560_v54 = vstv %s1674_s25  ;;  %s1160_s14 = scalar_lea.vmem %s1726_s3, 16  ;;  %s1164_s20 = sshll.u32 %s1246_s19, 4  ;;  %s1165_s20 = int_to_ptr.vmem [resolvable:$false] %s1164_s20 }
 0x1bb   : > { %1035 = vtanh.f32 %v579_v34  ;;  %v564_v55 = vstv %s1676_s11  ;;  %v582_v62 = vstv %s1679_s5  ;;  %v586_v63 = vstv %s1681_s12  ;;  %p1161_p0 = scmp.ne.s32.totalorder %s1726_s3, %s1160_s14  ;;  %s1166_s30 = scalar_lea.vmem %s1165_s20, 32 }
 0x1bc   : > { %1037 = vtanh.f32 %v601_v36  ;;  %v604_v5 = vstv %s1685_s8  ;;  %v608_v6 = vstv %s1687_s6  ;;  %v626_v12 = vstv %s1693_s22  ;;  %p1167_p5 = scmp.lt.s32.totalorder %s1726_s3, %s1165_s20  ;;  %p1168_p7 = scmp.lt.s32.totalorder %s1166_s30, %s1160_s14 }
 0x1bd   : > { %1039 = vtanh.f32 %v623_v38  ;;  %v630_v13 = vstv %s1695_s13  ;;  %v688_v14 = vsub.f32 0.0, %v1625_v51  ;;  %v648_v20 = vstv %s1699_s23  ;;  %p1162_p1 = pnand %p1161_p0, %p1802_p10 }
 0x1be   : > { %1041 = vtanh.f32 %v645_v40  ;;  %v652_v21 = vstv %s1701_s10  ;;  %v683_v22 = vsub.f32 0.0, %v1630_v57  ;;  %v670_v28 = vstv %s1705_s29  ;;  %p1169_p6 = por %p1168_p7, %p1167_p5 }
 0x1bf   : > { %1043 = vtanh.f32 %v667_v43  ;;  %v674_v29 = vstv %s1707_s9  ;;  %v689_v30 = vmul.f32 1.442695, %v688_v14  ;;  %p1163_p2 = pneg %p1162_p1 }
 0x1c0   : > { %v684_v34 = vmul.f32 1.442695, %v683_v22 }
 0x1c1   : > { %1045 = vpow2.f32 %v689_v30  ;;  %p1170_p11 = pnand %p1169_p6, %p1163_p2 }
 0x1c2   : > { %v1030_v45 = vpop.eup %1029  ;;  %1047 = vpow2.f32 %v684_v34 }
 0x1c3   : > { %v1032_v49 = vpop.eup %1031  ;;  %v517_v50 = vmul.f32 %v1030_v45, %v516_v41  ;;  %v521_v52 = vmul.f32 %v1030_v45, %v520_v42 }
 0x1c4   : > { %v1034_v53 = vpop.eup %1033  ;;  %v539_v59 = vmul.f32 %v1032_v49, %v538_v47  ;;  %v543_v60 = vmul.f32 %v1032_v49, %v542_v48 }
 0x1c5   : > { %v518_v56 = vadd.f32 %v517_v50, %v498_v44  ;;  %v522_v58 = vadd.f32 %v521_v52, %v500_v46  ;;  %v1036_v61 = vpop.eup %1035  ;;  %v561_v2 = vmul.f32 %v1034_v53, %v560_v54  ;;  %v565_v3 = vmul.f32 %v1034_v53, %v564_v55 }
 0x1c6   : > { %v1038_v4 = vpop.eup %1037  ;;  %v583_v9 = vmul.f32 %v1036_v61, %v582_v62  ;;  %v587_v10 = vmul.f32 %v1036_v61, %v586_v63 }
 0x1c7   : > { %v540_v0 = vadd.f32 %v539_v59, %v518_v56  ;;  %v544_v1 = vadd.f32 %v543_v60, %v522_v58  ;;  %v1040_v11 = vpop.eup %1039  ;;  %v605_v17 = vmul.f32 %v1038_v4, %v604_v5  ;;  %v609_v18 = vmul.f32 %v1038_v4, %v608_v6 }
 0x1c8   : > { %v1042_v19 = vpop.eup %1041  ;;  %v627_v25 = vmul.f32 %v1040_v11, %v626_v12  ;;  %v631_v26 = vmul.f32 %v1040_v11, %v630_v13 }
 0x1c9   : > { %v562_v7 = vadd.f32 %v561_v2, %v540_v0  ;;  %v566_v8 = vadd.f32 %v565_v3, %v544_v1  ;;  %v1044_v27 = vpop.eup %1043  ;;  %v649_v51 = vmul.f32 %v1042_v19, %v648_v20  ;;  %v653_v33 = vmul.f32 %v1042_v19, %v652_v21 }
 0x1ca   : > { %v671_v37 = vmul.f32 %v1044_v27, %v670_v28  ;;  %v675_v38 = vmul.f32 %v1044_v27, %v674_v29 }
 0x1cb   : > { %v584_v15 = vadd.f32 %v583_v9, %v562_v7  ;;  %v588_v16 = vadd.f32 %v587_v10, %v566_v8  ;;  %v1046_v42 = vpop.eup %1045 }
 0x1cc   : > { %v1048_v43 = vpop.eup %1047  ;;  %v691_v44 = vadd.f32 1.0, %v1046_v42 }
 0x1cd   : > { %v606_v23 = vadd.f32 %v605_v17, %v584_v15  ;;  %v610_v24 = vadd.f32 %v609_v18, %v588_v16  ;;  %v686_v45 = vadd.f32 1.0, %v1048_v43 }
 0x1cf   : > { %v628_v31 = vadd.f32 %v627_v25, %v606_v23  ;;  %v632_v32 = vadd.f32 %v631_v26, %v610_v24 }
 0x1d1   : > { %v650_v35 = vadd.f32 %v649_v51, %v628_v31  ;;  %v654_v36 = vadd.f32 %v653_v33, %v632_v32 }
 0x1d3   : > { %v672_v39 = vadd.f32 %v671_v37, %v650_v35  ;;  %v676_v40 = vadd.f32 %v675_v38, %v654_v36 }
 0x1d5   : > { %v677_v57 = vsub.f32 %v676_v40, %v672_v39 }
 0x1d7   : > { %v678_v41 = vmul.f32 1.442695, %v677_v57 }
 0x1d9   : > { %1049 = vpow2.f32 %v678_v41 }
 0x1da   : > { %1051 = vrcp.f32 %v691_v44 }
 0x1db   : > { %1053 = vrcp.f32 %v686_v45 }
 0x1e3   : > { %v1050_v46 = vpop.eup %1049 }
 0x1e4   : > { %v680_v47 = vadd.f32 1.0, %v1050_v46  ;;  %v1052_v48 = vpop.eup %1051 }
 0x1e5   : > { %v1054_v49 = vpop.eup %1053  ;;  %v695_v54 = vrot.slane %v1052_v48, 1 }
 0x1e6   : > { %1055 = vrcp.f32 %v680_v47 }
 0x1f0   : > { %v1056_v50 = vpop.eup %1055 }
 0x1f1   : > { %v682_v52 = vsub.f32 1.0, %v1056_v50  ;;  %v693_v53 = vmul.f32 %v1056_v50, %v1054_v49 }
 0x1f3   : > { %v697_v55 = vmul.f32 %v695_v54, %v682_v52 }
 0x1f5   : > { %v698_v56 = vadd.f32 %v697_v55, %v693_v53 }
 0x1f7   : > { %699 = vst [vmem:[%s282_s2] sm:$0x1] %v698_v56 }
 0x1f8   : > { %1173 = shalt.err (!%p1170_p11)
}
 0x1f9   : > { %s1174_s0 = scalar_lea.hbm %s1724_s26, 16  ;;  %s1178_s5 = scalar_lea.hbm %s1771_s4, 64 }
 0x1fa   : > { %p1175_p9 = scmp.ne.s32.totalorder %s1724_s26, %s1174_s0  ;;  %p1179_p12 = scmp.lt.u32.totalorder %s1724_s26, %s1771_s4 }
 0x1fb   : > { %p1180_p13 = scmp.lt.u32.totalorder %s1178_s5, %s1174_s0  ;;  %p1182_p0 = scmp.lt.u32.totalorder %s1174_s0, %s1724_s26 }
 0x1fc   : > { %p1176_p4 = pnand %p1175_p9, %p1802_p10 }
 0x1fd   : > { %p1181_p3 = por %p1180_p13, %p1179_p12 }
 0x1fe   : > { %p1177_p8 = pneg %p1176_p4 }
 0x1ff   : > { %p1183_p1 = por %p1182_p0, %p1181_p3 }
 0x201   : > { %p1184_p2 = pnand %p1183_p1, %p1177_p8 }
 0x203   : > { %1187 = shalt.err (!%p1184_p2)
}
 0x204   : > { %967 = dma.vmem_to_hbm [thread:$0]  (%p1802_p10), %s1726_s3, 16, %s1724_s26, %s701_s7  }
 0x205 PF: > { %p992_p5 = scmp.ge.s32.totalorder %s1238_s18, 2  ;;  %s725_s6 = sand.u32 1, %s1226_s15  }
 0x206   : > { %p1803_p7 = scmp.ne.s32.totalorder %s1787_s28, 0  ;;  %s726_s22 = scalar_lea.sflag [#allocation4], %s725_s6 }
 0x208   : > { %p984_p6 = pnand %p992_p5, %p1803_p7 }
 0x20a   : > { %1221 = dma.done.wait (!%p984_p6), %s726_s22, 16  }
 0x20b   : > { %1223 = vsyncadd (!%p984_p6), %s726_s22, 4294967280  ;;  %s1804_s13 = sld [smem:[#allocation16_spill]]  ;;  %s1805_s17 = sld [smem:[#allocation17_spill]] }
 0x20c   : > { %p21_p11 = scmp.ge.s32.totalorder %s1297_s21, 6   ;;  %s1806_s15 = smov %s1230_s16 }
 0x20d   : > { %s1808_s18 = smov %s1297_s21 }
 0x20e   :  { %23 = sbr.rel (!%p21_p11) target bundleno = 13 (0xd), region = 103 }
 0x211   : > { %s1807_s16 = smov %s1804_s13 }
 0x215   :  { %730 = vsyncpa [#allocation3], 1 }
 0x216   :  { %732 = vsyncpa [#allocation3 + $0x1], 1 }
 0x217   :  { %733 = vsyncpa [#allocation7], 1 }
 0x218   :  { %735 = vsyncpa [#allocation7 + $0x1], 1 }
 0x219   :  { %736 = vsyncpa [#allocation4], 1 }
 0x21a   :  { %738 = vsyncpa [#allocation4 + $0x1], 1 }
 0x21b   :  { %739 = vsyncpa [#allocation5], 1 }
 0x21c   :  { %741 = vsyncpa [#allocation5 + $0x1], 1 }

</bundles_post_ra>
